<compile_context>
chip_gen: v7x
topology: tpu7x:2x2x1
jax: 0.10.0
libtpu: 0.0.40
codegen_flags: <defaults>
</compile_context>

<pallas_src>
import functools

import jax
import jax.numpy as jnp
from jax.experimental import pallas as pl
from jax.experimental.pallas import tpu as pltpu


def _round_up(x, m):
    return ((x + m - 1) // m) * m


def _simple_cat_kernel(seed_ref,                 # scalar-prefetch (SMEM): dropout seed
                       sent_ref, mask_ref,       # (TB, 1) int32 id blocks (VMEM)
                       wtab_ref, mtab_ref,       # resident padded tables (vocab,OD)/(2,OD)
                       o_ref,                    # (TB, OD) output block
                       *, vocab, dropout_rate, training):
    sent_ids = sent_ref[...]                     # (TB, 1) int32
    mask_ids = mask_ref[...]                     # (TB, 1) int32
    tb = sent_ids.shape[0]
    out_dim = o_ref.shape[-1]

    # Word-embedding gather as a one-hot MXU matmul against the zero-padded
    # (vocab, out_dim) table: result already sits in lanes [0, embed_dim).
    onehot = (sent_ids == jax.lax.broadcasted_iota(jnp.int32, (tb, vocab), 1)
              ).astype(wtab_ref.dtype)                                    # (TB, vocab)
    wv = jnp.dot(onehot, wtab_ref[...],
                 preferred_element_type=jnp.float32)                      # (TB, out_dim)

    if training and dropout_rate > 0.0:
        # Inverted dropout; one seed + one bit-block per grid step.
        # (RNG stream differs from PyTorch, as expected for a synthetic kernel.)
        pltpu.prng_seed(seed_ref[0] + pl.program_id(0))
        bits = pltpu.bitcast(pltpu.prng_random_bits((tb, out_dim)), jnp.uint32)
        keep_thresh = jnp.uint32(int(round((1.0 - dropout_rate) * (2.0 ** 32 - 1))))
        keep = bits < keep_thresh
        wv = jnp.where(keep, wv * (1.0 / (1.0 - dropout_rate)), 0.0)
        # Mask lanes of wtab are zero, so dropout there is a no-op -> only the
        # word-embedding part is dropped, matching the PyTorch module.

    # Mask-embedding gather: 2-row padded table -> vectorized select; result
    # already sits in lanes [embed_dim, out_dim).
    mtab = mtab_ref[...].astype(jnp.float32)                              # (2, out_dim)
    mv = jnp.where(mask_ids == 0, mtab[0:1, :], mtab[1:2, :])             # (TB, out_dim)

    # Concatenation == add of the two disjoint-lane contributions; single dense
    # lane/sublane-aligned (TB, out_dim) store per grid step.
    o_ref[...] = (wv + mv).astype(o_ref.dtype)


def simple_cat(sent, mask, word_embed_w, mask_embed_w, *,
               dropout_rate=0.0, training=False, seed=0, block_tokens=512):
    """Forward pass of SimpleCat.  Eval mode (training=False) -> dropout is identity."""
    L = sent.shape[0]
    vocab, embed_dim = word_embed_w.shape
    _, mask_dim = mask_embed_w.shape
    out_dim = embed_dim + mask_dim
    out_dtype = word_embed_w.dtype

    # Zero-pad both tables into a shared (*, out_dim) lane layout (one-time,
    # host side) so the in-kernel gather produces the concatenated row directly.
    wtab = jnp.concatenate(
        [word_embed_w, jnp.zeros((vocab, mask_dim), word_embed_w.dtype)], axis=1)
    mtab = jnp.concatenate(
        [jnp.zeros((2, embed_dim), mask_embed_w.dtype), mask_embed_w], axis=1)

    # Token blocking: TB multiple of 8 (sublane), pad L up to a multiple of TB.
    tb = min(block_tokens, _round_up(L, 8))
    L_pad = _round_up(L, tb)
    sent_p = jnp.zeros((L_pad, 1), jnp.int32).at[:L, 0].set(sent.astype(jnp.int32))
    mask_p = jnp.zeros((L_pad, 1), jnp.int32).at[:L, 0].set(mask.astype(jnp.int32))

    kernel = functools.partial(
        _simple_cat_kernel, vocab=vocab,
        dropout_rate=float(dropout_rate), training=bool(training))

    grid_spec = pltpu.PrefetchScalarGridSpec(
        num_scalar_prefetch=1,                   # dropout seed
        grid=(L_pad // tb,),
        in_specs=[
            pl.BlockSpec((tb, 1), lambda b, seed_r: (b, 0)),           # sent ids
            pl.BlockSpec((tb, 1), lambda b, seed_r: (b, 0)),           # mask ids
            pl.BlockSpec((vocab, out_dim), lambda b, seed_r: (0, 0)),  # resident word tab
            pl.BlockSpec((2, out_dim), lambda b, seed_r: (0, 0)),      # resident mask tab
        ],
        out_specs=pl.BlockSpec((tb, out_dim), lambda b, seed_r: (b, 0)),
    )

    fn = pl.pallas_call(
        kernel,
        grid_spec=grid_spec,
        out_shape=jax.ShapeDtypeStruct((L_pad, out_dim), out_dtype),
        compiler_params=pltpu.CompilerParams(dimension_semantics=("parallel",)),
    )
    seed_arr = jnp.asarray([seed], dtype=jnp.int32)
    out = fn(seed_arr, sent_p, mask_p, wtab, mtab)
    return out[:L]


if __name__ == "__main__":
    key = jax.random.PRNGKey(0)
    k_w, k_m, k_sent, k_mask, k_sent2, k_mask2 = jax.random.split(key, 6)

    # config: embed_num=50, embed_dim=32, mask_dim=16, dropout=0.5
    embed_num, embed_dim, mask_dim = 50, 32, 16
    seq_len = 8
    dropout = 0.5

    # Deterministic synthetic parameters (nn.Embedding default init ~ N(0, 1)).
    word_embed_w = jax.random.normal(k_w, (embed_num, embed_dim), jnp.float32)
    mask_embed_w = jax.random.normal(k_m, (2, mask_dim), jnp.float32)

    sent = jax.random.randint(k_sent, (seq_len,), 0, embed_num, jnp.int32)
    mask = jax.random.randint(k_mask, (seq_len,), 0, 2, jnp.int32)

    # Eval-mode forward (nn.Dropout is identity in eval); the training-mode
    # dropout path is implemented in-kernel with the TPU PRNG (see kernel).
    out = simple_cat(sent, mask, word_embed_w, mask_embed_w,
                     dropout_rate=dropout, training=False)
    out = jax.block_until_ready(out)

    ref = jnp.concatenate([word_embed_w[sent], mask_embed_w[mask]], axis=1)
    assert out.shape == (seq_len, embed_dim + mask_dim)
    assert jnp.allclose(out, ref), "kernel output mismatch vs reference (L=8)"

    # Second check: longer sequence exercising multiple token blocks + padding.
    seq_len2 = 600
    sent2 = jax.random.randint(k_sent2, (seq_len2,), 0, embed_num, jnp.int32)
    mask2 = jax.random.randint(k_mask2, (seq_len2,), 0, 2, jnp.int32)
    out2 = jax.block_until_ready(
        simple_cat(sent2, mask2, word_embed_w, mask_embed_w,
                   dropout_rate=dropout, training=False))
    ref2 = jnp.concatenate([word_embed_w[sent2], mask_embed_w[mask2]], axis=1)
    assert out2.shape == (seq_len2, embed_dim + mask_dim)
    assert jnp.allclose(out2, ref2), "kernel output mismatch vs reference (L=600)"

    print("KERNEL_OK")
</pallas_src>

<mosaic_0001>
module attributes {stable_mosaic.version = 11 : i64} {
  func.func @_simple_cat_kernel(%arg0: i32, %arg1: memref<1xi32, #tpu.memory_space<smem>>, %arg2: memref<8x1xi32, #tpu.memory_space<vmem>>, %arg3: memref<8x1xi32, #tpu.memory_space<vmem>>, %arg4: memref<50x48xf32, #tpu.memory_space<vmem>>, %arg5: memref<2x48xf32, #tpu.memory_space<vmem>>, %arg6: memref<8x48xf32, #tpu.memory_space<vmem>>) attributes {dimension_semantics = [#tpu.dimension_semantics<parallel>], iteration_bounds = array<i64: 1>, scalar_prefetch = 1 : i64, scratch_operands = 0 : i64, tpu.core_type = #tpu.core_type<tc>, window_params = [{transform_indices = @transform_0, window_bounds = array<i64: 8, 1>}, {transform_indices = @transform_1, window_bounds = array<i64: 8, 1>}, {pipeline_mode = #tpu.pipeline_mode<synchronous>, transform_indices = @transform_2, window_bounds = array<i64: 50, 48>}, {pipeline_mode = #tpu.pipeline_mode<synchronous>, transform_indices = @transform_3, window_bounds = array<i64: 2, 48>}, {transform_indices = @transform_4, window_bounds = array<i64: 8, 48>}]} {
    %c0 = arith.constant 0 : index
    %c0_0 = arith.constant 0 : index
    %0 = vector.load %arg2[%c0, %c0_0] : memref<8x1xi32, #tpu.memory_space<vmem>>, vector<8x1xi32>
    %c0_1 = arith.constant 0 : index
    %c0_2 = arith.constant 0 : index
    %1 = vector.load %arg3[%c0_1, %c0_2] : memref<8x1xi32, #tpu.memory_space<vmem>>, vector<8x1xi32>
    %2 = tpu.iota {dimensions = array<i32: 1>} : vector<8x50xi32>
    %3 = vector.broadcast %0 : vector<8x1xi32> to vector<8x50xi32>
    %4 = arith.cmpi eq, %3, %2 : vector<8x50xi32>
    %5 = arith.extui %4 : vector<8x50xi1> to vector<8x50xi32>
    %6 = arith.sitofp %5 : vector<8x50xi32> to vector<8x50xf32>
    %c0_3 = arith.constant 0 : index
    %c0_4 = arith.constant 0 : index
    %7 = vector.load %arg4[%c0_3, %c0_4] : memref<50x48xf32, #tpu.memory_space<vmem>>, vector<50x48xf32>
    %cst = arith.constant dense<0.000000e+00> : vector<8x48xf32>
    %8 = tpu.matmul %6, %7, %cst {dimension_numbers = #tpu.dot_dimension_numbers<[1], [0], [0], [1], [0, 0, 1, 1], [], []>} : vector<8x50xf32>, vector<50x48xf32>, vector<8x48xf32> -> vector<8x48xf32>
    %c0_5 = arith.constant 0 : index
    %c0_6 = arith.constant 0 : index
    %9 = vector.load %arg5[%c0_5, %c0_6] : memref<2x48xf32, #tpu.memory_space<vmem>>, vector<2x48xf32>
    %c0_i32 = arith.constant 0 : i32
    %10 = vector.broadcast %c0_i32 : i32 to vector<8x1xi32>
    %11 = arith.cmpi eq, %1, %10 : vector<8x1xi32>
    %12 = vector.extract_strided_slice %9 {offsets = [0, 0], sizes = [1, 48], strides = [1, 1]} : vector<2x48xf32> to vector<1x48xf32>
    %13 = vector.extract_strided_slice %9 {offsets = [1, 0], sizes = [1, 48], strides = [1, 1]} : vector<2x48xf32> to vector<1x48xf32>
    %14 = vector.shape_cast %11 : vector<8x1xi1> to vector<8x1xi1>
    %15 = vector.broadcast %14 : vector<8x1xi1> to vector<8x48xi1>
    %16 = vector.shape_cast %12 : vector<1x48xf32> to vector<1x48xf32>
    %17 = vector.broadcast %16 : vector<1x48xf32> to vector<8x48xf32>
    %18 = vector.shape_cast %13 : vector<1x48xf32> to vector<1x48xf32>
    %19 = vector.broadcast %18 : vector<1x48xf32> to vector<8x48xf32>
    %20 = arith.select %15, %17, %19 : vector<8x48xi1>, vector<8x48xf32>
    %21 = arith.addf %8, %20 : vector<8x48xf32>
    %c0_7 = arith.constant 0 : index
    %c0_8 = arith.constant 0 : index
    %22 = vector.load %arg6[%c0_7, %c0_8] : memref<8x48xf32, #tpu.memory_space<vmem>>, vector<8x48xf32>
    tpu.vector_store %arg6[%c0_7, %c0_8], %21 {strides = array<i32>} : memref<8x48xf32, #tpu.memory_space<vmem>>, vector<8x48xf32>,
    return
  }
  func.func @transform_0(%arg0: i32, %arg1: memref<1xi32, #tpu.memory_space<smem>>) -> (i32, i32) {
    %c0_i32 = arith.constant 0 : i32
    %c0_i32_0 = arith.constant 0 : i32
    return %arg0, %c0_i32 : i32, i32
  }
  func.func @transform_1(%arg0: i32, %arg1: memref<1xi32, #tpu.memory_space<smem>>) -> (i32, i32) {
    %c0_i32 = arith.constant 0 : i32
    %c0_i32_0 = arith.constant 0 : i32
    return %arg0, %c0_i32 : i32, i32
  }
  func.func @transform_2(%arg0: i32, %arg1: memref<1xi32, #tpu.memory_space<smem>>) -> (i32, i32) {
    %c0_i32 = arith.constant 0 : i32
    %c0_i32_0 = arith.constant 0 : i32
    %c0_i32_1 = arith.constant 0 : i32
    return %c0_i32, %c0_i32_0 : i32, i32
  }
  func.func @transform_3(%arg0: i32, %arg1: memref<1xi32, #tpu.memory_space<smem>>) -> (i32, i32) {
    %c0_i32 = arith.constant 0 : i32
    %c0_i32_0 = arith.constant 0 : i32
    %c0_i32_1 = arith.constant 0 : i32
    return %c0_i32, %c0_i32_0 : i32, i32
  }
  func.func @transform_4(%arg0: i32, %arg1: memref<1xi32, #tpu.memory_space<smem>>) -> (i32, i32) {
    %c0_i32 = arith.constant 0 : i32
    %c0_i32_0 = arith.constant 0 : i32
    return %arg0, %c0_i32 : i32, i32
  }
}

</mosaic_0001>

<bundles_post_ra>
// kernel: tpu_custom_call.1
= control target key start
LH: loop header
LB: loop body
LE: loop exit
PB: predicated region body
PF: predicated region fallthrough
CT: control target
= control target key end

     0   :  { %v214_v3 = vmov 0   ;;  %v215_v4 = vmov 0.0|0.0   ;;  %s291_s0 = inlined_call_operand.<no memory space> [shape: s32[1], index: 0, kind: input, shape index: {}]   ;;  %s292_s1 = inlined_call_operand.vmem [shape: s32[8,1], index: 1, kind: input, shape index: {}]   ;;  %s293_s2 = inlined_call_operand.vmem [shape: s32[8,1], index: 2, kind: input, shape index: {}]   ;;  %s294_s3 = inlined_call_operand.vmem [shape: f32[50,48], index: 3, kind: input, shape index: {}]   ;;  %s295_s4 = inlined_call_operand.vmem [shape: f32[2,48], index: 4, kind: input, shape index: {}]   ;;  %s296_s5 = inlined_call_operand.hbm [shape: f32[8,48], index: 5, kind: output, shape index: {}]  }
   0x1   :  { %v21_v0 = vld [vmem:[%s293_s2] sm:$0xff]  ;;  %189 = vset.pattern.permute.xlu0 %v214_v3  ;;  %175 = vmatprep.subr.bf16.mxu0 %v215_v4  ;;  %v31_v5 = vld [vmem:[%s294_s3 + $0x8] sm:$0xff]  ;;  %v32_v6 = vld [vmem:[%s294_s3 + $0x10] sm:$0xff] }
   0x2   :  { %v20_v1 = vld [vmem:[%s292_s1] sm:$0xff]  ;;  %vm38_vm0 = vcmp.eq.s32.totalorder %v21_v0, 0  ;;  %v33_v7 = vld [vmem:[%s294_s3 + $0x18] sm:$0xff] }
   0x3   :  { %v30_v2 = vld [vmem:[%s294_s3] sm:$0xff]  ;;  %25 = vperm.xlu0 %189, %v20_v1   ;;  %v39_v9 = vsel %vm38_vm0, 1, %v214_v3 }
   0x4   :  { %v176_v8 = vpack.c.bf16 %v31_v5, %v30_v2 }
   0x5   :  { %11 = vsyncpa [#allocation5], 0  ;;  %v179_v10 = vpack.c.bf16 %v33_v7, %v32_v6  ;;  %vm216_vm1 = vmmov 0   ;;  %v217_v11 = vmov 0.0   ;;  %v34_v12 = vld [vmem:[%s294_s3 + $0x20] sm:$0xff]  ;;  %v35_v13 = vld [vmem:[%s294_s3 + $0x28] sm:$0xff]  ;;  %v22_v16 = vlaneseq }
   0x6   :  { %177 = vmatpush3.bf16.msra.mxu0 %v176_v8  ;;  %172 = vmatprep.mubr.msk.f32.mxu0 %vm216_vm1, %v217_v11  ;;  %v182_v14 = vpack.c.bf16 %v35_v13, %v34_v12  ;;  %v36_v15 = vld [vmem:[%s294_s3 + $0x30] sm:$0x3]  ;;  %vm57_vm2 = vcmask 1041408   ;;  %vm53_vm3 = vcmask 408576   ;;  %v37_v23 = vld [vmem:[%s295_s4] sm:$0x3] }
   0x7   :  { %178 = vmatprep.subr.bf16.mxu0 %v215_v4  ;;  %41 = vperm.xlu0 %189, %v39_v9   ;;  %v23_v17 = vand.u32 127, %v22_v16  ;;  %v45_v20 = vshrl.u32 %v22_v16, 7  ;;  %s218_s3 = smov [#allocation4]   ;;  %vm131_vm6 = vcmask 392192  }
   0x8   :  { %s139_s10 = sshll.u32 %s218_s3, 4  ;;  %s140_s10 = int_to_ptr.vmem [resolvable:$true] %s139_s10 }
   0x9   :  { %v46_v21 = vsub.s32 0, %v45_v20  ;;  %v50_v22 = vsub.s32 1, %v45_v20  ;;  %s190_s11 = scalar_lea.vmem %s140_s10, 128  ;;  %p195_p1 = scmp.lt.s32.totalorder %s140_s10, %s140_s10 }
   0xa   :  { %180 = vmatpush3.bf16.msra.mxu0 %v179_v10  ;;  %p191_p0 = scmp.ne.s32.totalorder %s140_s10, %s190_s11  ;;  %p196_p2 = scmp.lt.s32.totalorder %s190_s11, %s190_s11 }
   0xb   :  { %181 = vmatprep.subr.bf16.mxu0 %v215_v4  ;;  %v47_v25 = vrot.slane %v37_v23, %v46_v21  ;;  %v51_v26 = vrot.slane %v37_v23, %v50_v22 }
   0xc   :  { %p197_p3 = por %p196_p2, %p195_p1 }
   0xe   :  { %183 = vmatpush3.bf16.msra.mxu0 %v182_v14  ;;  %p198_p4 = pnand %p197_p3, %p191_p0 }
   0xf   :  { %170 = vmatprep.subr.mxu0 %v217_v11 }
  0x12   :  { %171 = vmatpush3.msk.msra.mxu0 %vm57_vm2, %v36_v15 }
  0x82   :  { %v26_v18 = vpop.permute.xlu0 %25 }
  0x83   :  { %vm27_vm4 = vcmp.eq.s32.totalorder %v26_v18, %v23_v17 }
  0x84   :  { %v147_v19 = vsel %vm27_vm4, 1.0, %v217_v11 }
  0x85   :  { %173 = vmatmul.mubr.msk.f32.vlgmr.msra.gmra.mrb[0].mxu0 %vm53_vm3, %v147_v19 }
  0x86   :  { %v42_v24 = vpop.permute.xlu0 %41 }
  0x87   :  { %vm43_vm5 = vcmp.eq.s32.totalorder %v42_v24, 1 }
  0x88   :  { %v52_v27 = vsel %vm43_vm5, %v47_v25, %v51_v26 }
 0x158   :  { %v127_v28 = vpop.f32.mrb[0].mxu0 }
 0x159   :  { %v128_v29 = vadd.f32 %v127_v28, %v52_v27  ;;  %v174_v30 = vpop.f32.mrb[1].mxu0 }
 0x15b   :  { %132 = vst.msk [vmem:[#allocation4] sm:$0xff] %vm131_vm6, %v128_v29 }
 0x15c   :  { %201 = shalt.err (!%p198_p4)
}
 0x15d   :  { %s202_s13 = scalar_lea.hbm %s296_s5, 128 }
 0x15e   :  { %p203_p5 = scmp.ne.s32.totalorder %s296_s5, %s202_s13  ;;  %p206_p6 = scmp.lt.u32.totalorder %s202_s13, %s296_s5 }
 0x160   :  { %p208_p7 = pnand %p206_p6, %p203_p5 }
 0x162   :  { %211 = shalt.err (!%p208_p7)
}
 0x163   :  { %142 = dma.vmem_to_hbm [thread:$0]  %s140_s10, 128, %s296_s5, [#allocation5]  }
 0x164   :  { %212 = dma.done.wait [#allocation5], 128  }
 0x165   :  { %213 = vsyncadd [#allocation5], 4294967168 }
 0x166   :  { %146 = vsyncpa [#allocation5], 1 }

</bundles_post_ra>
